<compile_context>
chip_gen: v6e
topology: v6e:2x2x1
jax: 0.10.0
libtpu: 0.0.40
codegen_flags: <defaults>
</compile_context>

<pallas_src>
import math

import jax
import jax.numpy as jnp
from jax import lax
from jax.experimental import pallas as pl
from jax.experimental.pallas import tpu as pltpu

_INV_SQRT2 = 1.0 / math.sqrt(2.0)


def _round_up(a, b):
    return ((a + b - 1) // b) * b


def fc_forward(x_nchw, w1, b1, w2, b2, *, tile_n=4096):
    """FC forward pass.

    x_nchw : (B, Cin, H, W)      float32
    w1     : (Chid, Cin, 3, 3)   PyTorch Conv2d weight layout (OIHW)
    b1     : (Chid,)
    w2     : (Cout, Chid, 1, 1)
    b2     : (Cout,)
    returns (B, Cout, H, W)
    """
    B, Cin, H, W = x_nchw.shape
    Chid = w1.shape[0]
    Cout = w2.shape[0]
    HW = H * W

    # K for the fused 3x3 matmul: 9 taps * Cin channels + 1 ones-row for b1,
    # padded to a sublane multiple (f32 -> 8).
    KP = _round_up(9 * Cin + 1, 8)
    n_zero = KP - 9 * Cin - 1

    # Halo strip width: tap shifts in flattened coords are in [-(W+1), W+1];
    # round up to a lane multiple so halo blocks are 128-aligned.
    MR = _round_up(W + 1, 128)

    # Spatial (lane) tile: multiple of 128, >= MR, big enough to amortize
    # per-step overhead, split in two when B == 1 (v7x megacore).
    hw_round = _round_up(HW, 128)
    TN = min(tile_n, hw_round)
    if B == 1 and hw_round >= 256:
        TN = min(TN, _round_up(hw_round // 2, 128))
    TN = _round_up(max(TN, MR), 128)
    num_n = -(-HW // TN)
    N_total = num_n * TN

    # --- wrapper-side layout plumbing (cheap; no 9x im2col) -----------------
    x_flat = x_nchw.reshape(B, Cin, HW)                      # free reshape
    if N_total != HW:
        x_flat = jnp.pad(x_flat, ((0, 0), (0, 0), (0, N_total - HW)))

    # Per-tile halo strips (last MR elems of the previous tile / first MR of
    # the next tile); ~2*MR/TN extra input bytes, zeros at the image ends
    # (those positions are masked in-kernel anyway).
    xb = x_flat.reshape(B, Cin, num_n, TN)
    zstrip = jnp.zeros((B, Cin, 1, MR), x_flat.dtype)
    halo_l = jnp.concatenate([zstrip, xb[:, :, :-1, TN - MR:]], axis=2)
    halo_l = halo_l.reshape(B, Cin, num_n * MR)
    halo_r = jnp.concatenate([xb[:, :, 1:, :MR], zstrip], axis=2)
    halo_r = halo_r.reshape(B, Cin, num_n * MR)

    # Weights: tap-major / channel-minor columns; b1 folded in as an extra
    # column against the in-kernel ones row; zero columns pad K to KP.
    w1_taps = jnp.transpose(w1, (0, 2, 3, 1)).reshape(Chid, 9 * Cin)
    w1_aug = jnp.concatenate(
        [w1_taps, b1.reshape(Chid, 1),
         jnp.zeros((Chid, n_zero), w1_taps.dtype)], axis=1)   # (Chid, KP)
    w2_flat = w2[:, :, 0, 0]                                  # (Cout, Chid)
    b2_col = b2.reshape(Cout, 1)

    def _fc_kernel(xc_ref, hl_ref, hr_ref, w1_ref, w2_ref, b2_ref, o_ref):
        n = pl.program_id(1)

        xc = xc_ref[0]                                  # (Cin, TN)
        hl = hl_ref[0]                                  # (Cin, MR)
        hr = hr_ref[0]                                  # (Cin, MR)
        # Halo-extended row: column j holds flattened pixel n*TN + j - MR.
        full = jnp.concatenate([hl, xc, hr], axis=1)    # (Cin, MR+TN+MR)

        # Global flattened pixel index of each lane in this tile.
        q = n * TN + lax.broadcasted_iota(jnp.int32, (1, TN), 1)
        col = q % W
        ok_top = q >= W                     # row y-1 exists
        ok_bot = q < (H - 1) * W            # row y+1 exists
        ok_lft = col != 0                   # col x-1 exists
        ok_rgt = col != (W - 1)             # col x+1 exists

        # Build the (KP, TN) im2col slab in registers: 9 static shifted slices
        # of the halo-extended row, masked at image boundaries, plus a ones
        # row (b1) and zero padding rows.
        pieces = []
        for dy in range(3):
            for dx in range(3):
                s = (dy - 1) * W + (dx - 1)
                v = full[:, MR + s: MR + s + TN]        # (Cin, TN)
                m = None
                if dy == 0:
                    m = ok_top
                elif dy == 2:
                    m = ok_bot
                if dx == 0:
                    m = ok_lft if m is None else jnp.logical_and(m, ok_lft)
                elif dx == 2:
                    m = ok_rgt if m is None else jnp.logical_and(m, ok_rgt)
                if m is not None:
                    v = jnp.where(m, v, 0.0)
                pieces.append(v)
        pieces.append(jnp.ones((1, TN), xc.dtype))      # ones row -> b1
        if n_zero > 0:
            pieces.append(jnp.zeros((n_zero, TN), xc.dtype))
        patch = jnp.concatenate(pieces, axis=0)         # (KP, TN)

        # 3x3 conv (+b1) as one fused MXU matmul, N lane-dense.
        h = jnp.dot(w1_ref[...], patch, preferred_element_type=jnp.float32)
        # Exact erf-based GELU (matches torch.nn.GELU default numerics).
        h = 0.5 * h * (1.0 + lax.erf(h * _INV_SQRT2))
        # 1x1 conv over channels.
        out = jnp.dot(w2_ref[...], h, preferred_element_type=jnp.float32)
        out = out + b2_ref[...]
        o_ref[0] = out.astype(o_ref.dtype)

    grid = (B, num_n)

    out_flat = pl.pallas_call(
        _fc_kernel,
        out_shape=jax.ShapeDtypeStruct((B, Cout, N_total), x_nchw.dtype),
        grid_spec=pltpu.PrefetchScalarGridSpec(
            num_scalar_prefetch=0,
            grid=grid,
            in_specs=[
                pl.BlockSpec((1, Cin, TN), lambda b, n: (b, 0, n)),
                pl.BlockSpec((1, Cin, MR), lambda b, n: (b, 0, n)),
                pl.BlockSpec((1, Cin, MR), lambda b, n: (b, 0, n)),
                pl.BlockSpec((Chid, KP), lambda b, n: (0, 0)),
                pl.BlockSpec((Cout, Chid), lambda b, n: (0, 0)),
                pl.BlockSpec((Cout, 1), lambda b, n: (0, 0)),
            ],
            out_specs=pl.BlockSpec((1, Cout, TN), lambda b, n: (b, 0, n)),
        ),
        compiler_params=pltpu.CompilerParams(
            dimension_semantics=("parallel", "parallel")),
    )(x_flat, halo_l, halo_r, w1_aug, w2_flat, b2_col)

    # (B, Cout, H*W) is exactly flattened NCHW.
    if N_total != HW:
        out_flat = out_flat[:, :, :HW]
    return out_flat.reshape(B, Cout, H, W)


def _reference(x_nchw, w1, b1, w2, b2):
    """Pure-JAX reference (lax convs) for verification."""
    y = lax.conv_general_dilated(
        x_nchw, w1, window_strides=(1, 1), padding=((1, 1), (1, 1)),
        dimension_numbers=("NCHW", "OIHW", "NCHW"))
    y = y + b1.reshape(1, -1, 1, 1)
    y = jax.nn.gelu(y, approximate=False)
    y = lax.conv_general_dilated(
        y, w2, window_strides=(1, 1), padding=((0, 0), (0, 0)),
        dimension_numbers=("NCHW", "OIHW", "NCHW"))
    return y + b2.reshape(1, -1, 1, 1)


if __name__ == "__main__":
    # FC(dim=4, growth_rate=2.0) -> hidden_dim = 8
    B, dim, H, W = 2, 4, 16, 16
    hidden_dim = int(dim * 2.0)

    key = jax.random.PRNGKey(0)
    kx, k1, kb1, k2, kb2 = jax.random.split(key, 5)

    x = jax.random.normal(kx, (B, dim, H, W), dtype=jnp.float32)
    # Deterministic parameter init (synthetic; no checkpoint loading).
    w1 = jax.random.normal(k1, (hidden_dim, dim, 3, 3), jnp.float32) * 0.1
    b1 = jax.random.normal(kb1, (hidden_dim,), jnp.float32) * 0.1
    w2 = jax.random.normal(k2, (dim, hidden_dim, 1, 1), jnp.float32) * 0.1
    b2 = jax.random.normal(kb2, (dim,), jnp.float32) * 0.1

    out = fc_forward(x, w1, b1, w2, b2)
    out = jax.block_until_ready(out)

    ref = _reference(x, w1, b1, w2, b2)
    assert out.shape == (B, dim, H, W)
    assert jnp.allclose(out, ref, atol=1e-4, rtol=1e-4)

    print("KERNEL_OK")
</pallas_src>

<mosaic_0001>
module attributes {stable_mosaic.version = 11 : i64} {
  func.func @_fc_kernel(%arg0: i32, %arg1: i32, %arg2: memref<1x4x256xf32, #tpu.memory_space<vmem>>, %arg3: memref<1x4x128xf32, #tpu.memory_space<vmem>>, %arg4: memref<1x4x128xf32, #tpu.memory_space<vmem>>, %arg5: memref<8x40xf32, #tpu.memory_space<vmem>>, %arg6: memref<4x8xf32, #tpu.memory_space<vmem>>, %arg7: memref<4x1xf32, #tpu.memory_space<vmem>>, %arg8: memref<1x4x256xf32, #tpu.memory_space<vmem>>) attributes {dimension_semantics = [#tpu.dimension_semantics<parallel>, #tpu.dimension_semantics<parallel>], iteration_bounds = array<i64: 2, 1>, scalar_prefetch = 0 : i64, scratch_operands = 0 : i64, tpu.core_type = #tpu.core_type<tc>, window_params = [{transform_indices = @transform_0, window_bounds = array<i64: 1, 4, 256>}, {transform_indices = @transform_1, window_bounds = array<i64: 1, 4, 128>}, {transform_indices = @transform_2, window_bounds = array<i64: 1, 4, 128>}, {pipeline_mode = #tpu.pipeline_mode<synchronous>, transform_indices = @transform_3, window_bounds = array<i64: 8, 40>}, {pipeline_mode = #tpu.pipeline_mode<synchronous>, transform_indices = @transform_4, window_bounds = array<i64: 4, 8>}, {pipeline_mode = #tpu.pipeline_mode<synchronous>, transform_indices = @transform_5, window_bounds = array<i64: 4, 1>}, {transform_indices = @transform_6, window_bounds = array<i64: 1, 4, 256>}]} {
    %c0 = arith.constant 0 : index
    %c0_0 = arith.constant 0 : index
    %c0_1 = arith.constant 0 : index
    %0 = vector.load %arg2[%c0, %c0_0, %c0_1] : memref<1x4x256xf32, #tpu.memory_space<vmem>>, vector<1x4x256xf32>
    %1 = vector.shape_cast %0 : vector<1x4x256xf32> to vector<4x256xf32>
    %c0_2 = arith.constant 0 : index
    %c0_3 = arith.constant 0 : index
    %c0_4 = arith.constant 0 : index
    %2 = vector.load %arg3[%c0_2, %c0_3, %c0_4] : memref<1x4x128xf32, #tpu.memory_space<vmem>>, vector<1x4x128xf32>
    %3 = vector.shape_cast %2 : vector<1x4x128xf32> to vector<4x128xf32>
    %c0_5 = arith.constant 0 : index
    %c0_6 = arith.constant 0 : index
    %c0_7 = arith.constant 0 : index
    %4 = vector.load %arg4[%c0_5, %c0_6, %c0_7] : memref<1x4x128xf32, #tpu.memory_space<vmem>>, vector<1x4x128xf32>
    %5 = vector.shape_cast %4 : vector<1x4x128xf32> to vector<4x128xf32>
    %6 = tpu.concatenate %3, %1, %5 in 1 : vector<4x128xf32>, vector<4x256xf32>, vector<4x128xf32> -> vector<4x512xf32>
    %c256_i32 = arith.constant 256 : i32
    %7 = arith.muli %arg1, %c256_i32 : i32
    %8 = tpu.iota {dimensions = array<i32: 1>} : vector<1x256xi32>
    %9 = vector.broadcast %7 : i32 to vector<1x256xi32>
    %10 = arith.addi %9, %8 : vector<1x256xi32>
    %c16_i32 = arith.constant 16 : i32
    %c0_i32 = arith.constant 0 : i32
    %11 = arith.cmpi eq, %c16_i32, %c0_i32 : i32
    %c1_i32 = arith.constant 1 : i32
    %12 = arith.select %11, %c1_i32, %c16_i32 : i32
    %13 = vector.broadcast %12 : i32 to vector<1x256xi32>
    %14 = arith.remsi %10, %13 : vector<1x256xi32>
    %c0_i32_8 = arith.constant 0 : i32
    %15 = vector.broadcast %c0_i32_8 : i32 to vector<1x256xi32>
    %16 = arith.cmpi ne, %14, %15 : vector<1x256xi32>
    %c0_i32_9 = arith.constant 0 : i32
    %17 = vector.broadcast %c0_i32_9 : i32 to vector<1x256xi32>
    %18 = arith.cmpi slt, %14, %17 : vector<1x256xi32>
    %c0_i32_10 = arith.constant 0 : i32
    %19 = arith.cmpi slt, %12, %c0_i32_10 : i32
    %20 = vector.broadcast %19 : i1 to vector<1x256xi1>
    %21 = vector.broadcast %20 : vector<1x256xi1> to vector<1x256xi1>
    %22 = arith.xori %18, %21 : vector<1x256xi1>
    %23 = arith.andi %22, %16 : vector<1x256xi1>
    %24 = vector.broadcast %12 : i32 to vector<1x256xi32>
    %25 = arith.addi %14, %24 : vector<1x256xi32>
    %26 = arith.select %23, %25, %14 : vector<1x256xi1>, vector<1x256xi32>
    %c16_i32_11 = arith.constant 16 : i32
    %27 = vector.broadcast %c16_i32_11 : i32 to vector<1x256xi32>
    %28 = arith.cmpi sge, %10, %27 : vector<1x256xi32>
    %c240_i32 = arith.constant 240 : i32
    %29 = vector.broadcast %c240_i32 : i32 to vector<1x256xi32>
    %30 = arith.cmpi slt, %10, %29 : vector<1x256xi32>
    %c0_i32_12 = arith.constant 0 : i32
    %31 = vector.broadcast %c0_i32_12 : i32 to vector<1x256xi32>
    %32 = arith.cmpi ne, %26, %31 : vector<1x256xi32>
    %c15_i32 = arith.constant 15 : i32
    %33 = vector.broadcast %c15_i32 : i32 to vector<1x256xi32>
    %34 = arith.cmpi ne, %26, %33 : vector<1x256xi32>
    %35 = vector.extract_strided_slice %6 {offsets = [0, 111], sizes = [4, 256], strides = [1, 1]} : vector<4x512xf32> to vector<4x256xf32>
    %36 = arith.andi %28, %32 : vector<1x256xi1>
    %cst = arith.constant 0.000000e+00 : f32
    %37 = vector.shape_cast %36 : vector<1x256xi1> to vector<1x256xi1>
    %38 = vector.broadcast %37 : vector<1x256xi1> to vector<4x256xi1>
    %39 = vector.broadcast %cst : f32 to vector<4x256xf32>
    %40 = arith.select %38, %35, %39 : vector<4x256xi1>, vector<4x256xf32>
    %41 = vector.extract_strided_slice %6 {offsets = [0, 112], sizes = [4, 256], strides = [1, 1]} : vector<4x512xf32> to vector<4x256xf32>
    %cst_13 = arith.constant 0.000000e+00 : f32
    %42 = vector.shape_cast %28 : vector<1x256xi1> to vector<1x256xi1>
    %43 = vector.broadcast %42 : vector<1x256xi1> to vector<4x256xi1>
    %44 = vector.broadcast %cst_13 : f32 to vector<4x256xf32>
    %45 = arith.select %43, %41, %44 : vector<4x256xi1>, vector<4x256xf32>
    %46 = vector.extract_strided_slice %6 {offsets = [0, 113], sizes = [4, 256], strides = [1, 1]} : vector<4x512xf32> to vector<4x256xf32>
    %47 = arith.andi %28, %34 : vector<1x256xi1>
    %cst_14 = arith.constant 0.000000e+00 : f32
    %48 = vector.shape_cast %47 : vector<1x256xi1> to vector<1x256xi1>
    %49 = vector.broadcast %48 : vector<1x256xi1> to vector<4x256xi1>
    %50 = vector.broadcast %cst_14 : f32 to vector<4x256xf32>
    %51 = arith.select %49, %46, %50 : vector<4x256xi1>, vector<4x256xf32>
    %52 = vector.extract_strided_slice %6 {offsets = [0, 127], sizes = [4, 256], strides = [1, 1]} : vector<4x512xf32> to vector<4x256xf32>
    %cst_15 = arith.constant 0.000000e+00 : f32
    %53 = vector.shape_cast %32 : vector<1x256xi1> to vector<1x256xi1>
    %54 = vector.broadcast %53 : vector<1x256xi1> to vector<4x256xi1>
    %55 = vector.broadcast %cst_15 : f32 to vector<4x256xf32>
    %56 = arith.select %54, %52, %55 : vector<4x256xi1>, vector<4x256xf32>
    %57 = vector.extract_strided_slice %6 {offsets = [0, 128], sizes = [4, 256], strides = [1, 1]} : vector<4x512xf32> to vector<4x256xf32>
    %58 = vector.extract_strided_slice %6 {offsets = [0, 129], sizes = [4, 256], strides = [1, 1]} : vector<4x512xf32> to vector<4x256xf32>
    %cst_16 = arith.constant 0.000000e+00 : f32
    %59 = vector.shape_cast %34 : vector<1x256xi1> to vector<1x256xi1>
    %60 = vector.broadcast %59 : vector<1x256xi1> to vector<4x256xi1>
    %61 = vector.broadcast %cst_16 : f32 to vector<4x256xf32>
    %62 = arith.select %60, %58, %61 : vector<4x256xi1>, vector<4x256xf32>
    %63 = vector.extract_strided_slice %6 {offsets = [0, 143], sizes = [4, 256], strides = [1, 1]} : vector<4x512xf32> to vector<4x256xf32>
    %64 = arith.andi %30, %32 : vector<1x256xi1>
    %cst_17 = arith.constant 0.000000e+00 : f32
    %65 = vector.shape_cast %64 : vector<1x256xi1> to vector<1x256xi1>
    %66 = vector.broadcast %65 : vector<1x256xi1> to vector<4x256xi1>
    %67 = vector.broadcast %cst_17 : f32 to vector<4x256xf32>
    %68 = arith.select %66, %63, %67 : vector<4x256xi1>, vector<4x256xf32>
    %69 = vector.extract_strided_slice %6 {offsets = [0, 144], sizes = [4, 256], strides = [1, 1]} : vector<4x512xf32> to vector<4x256xf32>
    %cst_18 = arith.constant 0.000000e+00 : f32
    %70 = vector.shape_cast %30 : vector<1x256xi1> to vector<1x256xi1>
    %71 = vector.broadcast %70 : vector<1x256xi1> to vector<4x256xi1>
    %72 = vector.broadcast %cst_18 : f32 to vector<4x256xf32>
    %73 = arith.select %71, %69, %72 : vector<4x256xi1>, vector<4x256xf32>
    %74 = vector.extract_strided_slice %6 {offsets = [0, 145], sizes = [4, 256], strides = [1, 1]} : vector<4x512xf32> to vector<4x256xf32>
    %75 = arith.andi %30, %34 : vector<1x256xi1>
    %cst_19 = arith.constant 0.000000e+00 : f32
    %76 = vector.shape_cast %75 : vector<1x256xi1> to vector<1x256xi1>
    %77 = vector.broadcast %76 : vector<1x256xi1> to vector<4x256xi1>
    %78 = vector.broadcast %cst_19 : f32 to vector<4x256xf32>
    %79 = arith.select %77, %74, %78 : vector<4x256xi1>, vector<4x256xf32>
    %cst_20 = arith.constant 1.000000e+00 : f32
    %80 = vector.broadcast %cst_20 : f32 to vector<1x256xf32>
    %cst_21 = arith.constant 0.000000e+00 : f32
    %81 = vector.broadcast %cst_21 : f32 to vector<3x256xf32>
    %82 = tpu.concatenate %40, %45, %51, %56, %57, %62, %68, %73, %79, %80, %81 in 0 : vector<4x256xf32>, vector<4x256xf32>, vector<4x256xf32>, vector<4x256xf32>, vector<4x256xf32>, vector<4x256xf32>, vector<4x256xf32>, vector<4x256xf32>, vector<4x256xf32>, vector<1x256xf32>, vector<3x256xf32> -> vector<40x256xf32>
    %c0_22 = arith.constant 0 : index
    %c0_23 = arith.constant 0 : index
    %83 = vector.load %arg5[%c0_22, %c0_23] : memref<8x40xf32, #tpu.memory_space<vmem>>, vector<8x40xf32>
    %cst_24 = arith.constant dense<0.000000e+00> : vector<8x256xf32>
    %84 = tpu.matmul %83, %82, %cst_24 {dimension_numbers = #tpu.dot_dimension_numbers<[1], [0], [0], [1], [0, 0, 1, 1], [], []>} : vector<8x40xf32>, vector<40x256xf32>, vector<8x256xf32> -> vector<8x256xf32>
    %cst_25 = arith.constant 5.000000e-01 : f32
    %85 = vector.broadcast %cst_25 : f32 to vector<8x256xf32>
    %86 = arith.mulf %85, %84 : vector<8x256xf32>
    %cst_26 = arith.constant 0.707106769 : f32
    %87 = vector.broadcast %cst_26 : f32 to vector<8x256xf32>
    %88 = arith.mulf %84, %87 : vector<8x256xf32>
    %89 = math.erf %88 : vector<8x256xf32>
    %cst_27 = arith.constant 1.000000e+00 : f32
    %90 = vector.broadcast %cst_27 : f32 to vector<8x256xf32>
    %91 = arith.addf %90, %89 : vector<8x256xf32>
    %92 = arith.mulf %86, %91 : vector<8x256xf32>
    %c0_28 = arith.constant 0 : index
    %c0_29 = arith.constant 0 : index
    %93 = vector.load %arg6[%c0_28, %c0_29] : memref<4x8xf32, #tpu.memory_space<vmem>>, vector<4x8xf32>
    %cst_30 = arith.constant dense<0.000000e+00> : vector<4x256xf32>
    %94 = tpu.matmul %93, %92, %cst_30 {dimension_numbers = #tpu.dot_dimension_numbers<[1], [0], [0], [1], [0, 0, 1, 1], [], []>} : vector<4x8xf32>, vector<8x256xf32>, vector<4x256xf32> -> vector<4x256xf32>
    %c0_31 = arith.constant 0 : index
    %c0_32 = arith.constant 0 : index
    %95 = vector.load %arg7[%c0_31, %c0_32] : memref<4x1xf32, #tpu.memory_space<vmem>>, vector<4x1xf32>
    %96 = vector.broadcast %95 : vector<4x1xf32> to vector<4x256xf32>
    %97 = arith.addf %94, %96 : vector<4x256xf32>
    %c0_33 = arith.constant 0 : index
    %c0_34 = arith.constant 0 : index
    %c0_35 = arith.constant 0 : index
    %98 = vector.load %arg8[%c0_33, %c0_34, %c0_35] : memref<1x4x256xf32, #tpu.memory_space<vmem>>, vector<1x4x256xf32>
    %99 = vector.shape_cast %98 : vector<1x4x256xf32> to vector<4x256xf32>
    %100 = vector.shape_cast %97 : vector<4x256xf32> to vector<1x4x256xf32>
    tpu.vector_store %arg8[%c0_33, %c0_34, %c0_35], %100 {strides = array<i32>} : memref<1x4x256xf32, #tpu.memory_space<vmem>>, vector<1x4x256xf32>,
    return
  }
  func.func @transform_0(%arg0: i32, %arg1: i32) -> (i32, i32, i32) {
    %c0_i32 = arith.constant 0 : i32
    %c0_i32_0 = arith.constant 0 : i32
    return %arg0, %c0_i32, %arg1 : i32, i32, i32
  }
  func.func @transform_1(%arg0: i32, %arg1: i32) -> (i32, i32, i32) {
    %c0_i32 = arith.constant 0 : i32
    %c0_i32_0 = arith.constant 0 : i32
    return %arg0, %c0_i32, %arg1 : i32, i32, i32
  }
  func.func @transform_2(%arg0: i32, %arg1: i32) -> (i32, i32, i32) {
    %c0_i32 = arith.constant 0 : i32
    %c0_i32_0 = arith.constant 0 : i32
    return %arg0, %c0_i32, %arg1 : i32, i32, i32
  }
  func.func @transform_3(%arg0: i32, %arg1: i32) -> (i32, i32) {
    %c0_i32 = arith.constant 0 : i32
    %c0_i32_0 = arith.constant 0 : i32
    %c0_i32_1 = arith.constant 0 : i32
    return %c0_i32, %c0_i32_0 : i32, i32
  }
  func.func @transform_4(%arg0: i32, %arg1: i32) -> (i32, i32) {
    %c0_i32 = arith.constant 0 : i32
    %c0_i32_0 = arith.constant 0 : i32
    %c0_i32_1 = arith.constant 0 : i32
    return %c0_i32, %c0_i32_0 : i32, i32
  }
  func.func @transform_5(%arg0: i32, %arg1: i32) -> (i32, i32) {
    %c0_i32 = arith.constant 0 : i32
    %c0_i32_0 = arith.constant 0 : i32
    %c0_i32_1 = arith.constant 0 : i32
    return %c0_i32, %c0_i32_0 : i32, i32
  }
  func.func @transform_6(%arg0: i32, %arg1: i32) -> (i32, i32, i32) {
    %c0_i32 = arith.constant 0 : i32
    %c0_i32_0 = arith.constant 0 : i32
    return %arg0, %c0_i32, %arg1 : i32, i32, i32
  }
}

</mosaic_0001>

<bundles_post_ra>
// kernel: tpu_custom_call.1
= control target key start
LH: loop header
LB: loop body
LE: loop exit
PB: predicated region body
PF: predicated region fallthrough
CT: control target
= control target key end

     0   :  { %s1572_s0 = inlined_call_operand.hbm [shape: f32[2,4,256], index: 0, kind: input, shape index: {}]   ;;  %s1573_s1 = inlined_call_operand.hbm [shape: f32[2,4,128], index: 1, kind: input, shape index: {}]   ;;  %s1574_s2 = inlined_call_operand.vmem [shape: f32[2,4,128], index: 2, kind: input, shape index: {}]   ;;  %s1575_s3 = inlined_call_operand.hbm [shape: f32[8,40], index: 3, kind: input, shape index: {}]   ;;  %s1576_s4 = inlined_call_operand.vmem [shape: f32[4,8], index: 4, kind: input, shape index: {}]   ;;  %s1577_s5 = inlined_call_operand.vmem [shape: f32[4,1], index: 5, kind: input, shape index: {}]   ;;  %s1578_s6 = inlined_call_operand.hbm [shape: f32[2,4,256], index: 6, kind: output, shape index: {}]  }
   0x1   :  { %1586 = sst [smem:[#allocation17_spill]] %s1572_s0 }
   0x2   :  { %1587 = sst [smem:[#allocation18_spill]] %s1575_s3 }
   0x3   :  { %11 = vsyncpa [#allocation3], 0 }
   0x4   :  { %13 = vsyncpa [#allocation3 + $0x1], 0 }
   0x5   :  { %14 = vsyncpa [#allocation6], 0 }
   0x6   :  { %16 = vsyncpa [#allocation6 + $0x1], 0 }
   0x7   :  { %17 = vsyncpa [#allocation4], 0 }
   0x8   :  { %19 = vsyncpa [#allocation4 + $0x1], 0  ;;  %s1261_s21 = smov 0   ;;  %s1263_s22 = smov 0  }
   0x9   :  { %s1265_s23 = smov 0   ;;  %s1267_s24 = smov 0  }
   0xa   :  { %s1269_s25 = smov 0   ;;  %s1271_s26 = smov 0  }
   0xb LB: > { %1588 = sst [smem:[#allocation13_spill]] %s1190_s21  ;;  %s1292_s27 = sadd.s32 4294967295, %s1210_s26   ;;  %s1210_s26 = sphi %s1271_s26, %s25_s26   ;;  %s1206_s25 = sphi %s1269_s25, %s1626_s25   ;;  %s1202_s24 = sphi %s1267_s24, %s1625_s24   ;;  %s1198_s23 = sphi %s1265_s23, %s1624_s23   ;;  %s1194_s22 = sphi %s1263_s22, %s1623_s22   ;;  %s1190_s21 = sphi %s1261_s21, %s1622_s21  }
   0xc   : > { %s920_s28 = sadd.s32 4294967294, %s1210_s26   ;;  %p53_p0 = scmp.ne.s32.totalorder %s1198_s23, %s1194_s22 }
   0xd   : > { %p59_p1 = scmp.ne.s32.totalorder %s1194_s22, %s1190_s21  ;;  %p1579_p2 = scmp.eq.s32.totalorder %s1292_s27, 0 }
   0xe   : > { %p204_p3 = scmp.eq.s32.totalorder %s1292_s27, 1  ;;  %p210_p4 = scmp.eq.s32.totalorder %s920_s28, 1 }
   0xf   : > { %p1304_p5 = por %p1579_p2, %p59_p1  ;;  %p921_p6 = scmp.ge.s32.totalorder %s1210_s26, 1 }
  0x10   : > { %p1312_p7 = por %p204_p3, %p53_p0  ;;  %p1316_p8 = por %p210_p4, %p59_p1 }
  0x11   : > { %s1589_s30 = scalar_select %p1304_p5, 1, 0 }
  0x12   : > { %s1590_s7 = scalar_select %p1312_p7, 1, 0 }
  0x13   : > { %s1591_s8 = scalar_select %p1316_p8, 1, 0 }
  0x14   : > { %p217_p9 = scmp.lt.s32.totalorder %s1210_s26, 3  ;;  %s1212_s10 = smov [#allocation7]  }
  0x15   : > { %1592 = sst [smem:[#allocation14_spill]] %s1591_s8  ;;  %s230_s11 = sshll.u32 %s1212_s10, 4  ;;  %s231_s11 = int_to_ptr.vmem [resolvable:$true] %s230_s11 }
  0x16   : > { %p1322_p11 = pnand %p921_p6, %p217_p9  ;;  %s37_s12 = sadd.s32 1, %s1206_s25 }
  0x17   : > { %p54_p13 = scmp.eq.s32.totalorder %s1210_s26, 0  ;;  %p1336_p1 = scmp.ge.s32.totalorder %s37_s12, 2 }
  0x18   : > { %s1593_s9 = scalar_select %p1322_p11, 1, 0 }
  0x19   : > { %p956_p12 = pneg %p1322_p11  ;;  %p1343_p4 = por %p54_p13, %p53_p0 }
  0x1a   : > { %p972_p6 = scmp.lt.s32.totalorder %s1210_s26, 2  ;;  %s1349_s16 = sand.u32 1, %s1198_s23  }
  0x1b   : > { %p1332_p3 = pnand %p956_p12, %p1579_p2  ;;  %s1051_s17 = scalar_lea.vmem %s231_s11, 128 }
  0x1c   : > { %p1052_p12 = scmp.ne.s32.totalorder %s231_s11, %s1051_s17  ;;  %p1059_p8 = scmp.lt.s32.totalorder %s231_s11, %s231_s11 }
  0x1d   : > { %p1042_p9 = pneg %p1332_p3  ;;  %p1060_p7 = scmp.lt.s32.totalorder %s1051_s17, %s1051_s17 }
  0x1f   : > { %p1054_p10 = pnand %p1052_p12, %p1042_p9  ;;  %p1061_p5 = por %p1060_p7, %p1059_p8 }
  0x21   : > { %p1055_p2 = pneg %p1054_p10 }
  0x23   : > { %p1062_p11 = pnand %p1061_p5, %p1055_p2 }
  0x25   : > { %1065 = shalt.err (!%p1062_p11)
}
  0x26   : > { %s1597_s3 = sld [smem:[#allocation18_spill]]  ;;  %s1628_s12 = smov (%p1336_p1, %s37_s12), 0 }
  0x27   : > { %1598 = sst [smem:[#allocation15_spill]] %s1628_s12  ;;  %s924_s20 = sshll.u32 %s1349_s16, 3 }
  0x28   : > { %s41_s28 = ssub.s32 %s1206_s25, %s1628_s12  ;;  %s944_s10 = sshll.u32 %s1206_s25, 7 }
  0x29   : > { %p44_p0 = scmp.eq.s32.totalorder %s41_s28, 0  ;;  %s1599_s0 = sld [smem:[#allocation17_spill]] }
  0x2a   : > { %s251_s19 = scalar_lea.vmem [#allocation2], %s924_s20  ;;  %s1600_s8 = sadd.s32 1, %s1198_s23 }
  0x2b   : > { %s261_s29 = sshll.u32 %s251_s19, 4  ;;  %p1378_p2 = pnand %p972_p6, %p1343_p4  ;;  %s262_s29 = int_to_ptr.vmem [resolvable:$true] %s261_s29 }
  0x2c   : > { %959 = dma.hbm_to_vmem [thread:$0]  (!%p1332_p3), %s1597_s3, 128, %s231_s11, [#allocation6]  }
  0x2d   : > { %s1372_s21 = scalar_select %p44_p0, %s1198_s23, %s1600_s8  }
  0x2e   : > { %s268_s14 = sand.u32 1, %s1210_s26   ;;  %s927_s28 = sshll.u32 %s1349_s16, 2 }
  0x2f   : > { %s259_s18 = scalar_lea.hbm %s1599_s0, %s944_s10  ;;  %1601 = sst [smem:[#allocation16_spill]] %s1372_s21 }
  0x30   : > { %s248_s3 = scalar_lea.sflag [#allocation3], %s1349_s16  ;;  %p1068_p5 = pneg %p1378_p2 }
  0x31   : > { %s1079_s10 = scalar_lea.vmem %s262_s29, 128  ;;  %s1213_s8 = smov [#allocation2]  }
  0x32   : > { %p1080_p7 = scmp.ne.s32.totalorder %s262_s29, %s1079_s10  ;;  %s1084_s15 = sshll.u32 %s1213_s8, 4  ;;  %s1085_s15 = int_to_ptr.vmem [resolvable:$false] %s1084_s15 }
  0x33   : > { %s1086_s20 = scalar_lea.vmem %s1085_s15, 256  ;;  %p1087_p11 = scmp.lt.s32.totalorder %s262_s29, %s1085_s15 }
  0x34   : > { %p1082_p8 = pnand %p1080_p7, %p1068_p5  ;;  %p1088_p13 = scmp.lt.s32.totalorder %s1086_s20, %s1079_s10 }
  0x36   : > { %p1083_p10 = pneg %p1082_p8  ;;  %p1089_p3 = por %p1088_p13, %p1087_p11 }
  0x38   : > { %p1090_p1 = pnand %p1089_p3, %p1083_p10 }
  0x3a   : > { %1093 = shalt.err (!%p1090_p1)
}
  0x3b   : > { %963 = dma.hbm_to_vmem [thread:$0]  (!%p1378_p2), %s259_s18, 128, %s262_s29, %s248_s3  }
  0x3c   : > { %s928_s16 = sshll.u32 %s1206_s25, 6  ;;  %s272_s0 = scalar_lea.vmem [#allocation5], %s927_s28 }
  0x3d   : > { %s278_s19 = scalar_lea.hbm %s1573_s1, %s928_s16  ;;  %s280_s12 = sshll.u32 %s272_s0, 4  ;;  %s281_s12 = int_to_ptr.vmem [resolvable:$true] %s280_s12 }
  0x3e   : > { %s269_s8 = scalar_lea.sflag [#allocation6], %s268_s14  ;;  %s1107_s21 = scalar_lea.vmem %s281_s12, 64 }
  0x3f   : > { %p1108_p4 = scmp.ne.s32.totalorder %s281_s12, %s1107_s21  ;;  %s1214_s10 = smov [#allocation5]  }
  0x40   : > { %s1112_s15 = sshll.u32 %s1214_s10, 4  ;;  %s1113_s15 = int_to_ptr.vmem [resolvable:$false] %s1112_s15 }
  0x41   : > { %p1110_p6 = pnand %p1108_p4, %p1068_p5  ;;  %s1114_s20 = scalar_lea.vmem %s1113_s15, 128 }
  0x42   : > { %p1115_p12 = scmp.lt.s32.totalorder %s281_s12, %s1113_s15  ;;  %p1116_p0 = scmp.lt.s32.totalorder %s1114_s20, %s1107_s21 }
  0x43   : > { %p1111_p9 = pneg %p1110_p6 }
  0x44   : > { %p1117_p7 = por %p1116_p0, %p1115_p12 }
  0x46   : > { %p1118_p8 = pnand %p1117_p7, %p1111_p9 }
  0x48   : > { %1121 = shalt.err (!%p1118_p8)
}
  0x49   : > { %966 = dma.hbm_to_vmem [thread:$0]  (!%p1378_p2), %s278_s19, 64, %s281_s12, %s269_s8  }
  0x4a   : > { %p1603_p10 = scmp.ne.s32.totalorder %s1593_s9, 0 }
  0x4b   : > { %s1404_s0 = sand.u32 (!%p1603_p10), 1, %s1194_s22   ;;  %p1604_p5 = scmp.ne.s32.totalorder (!%p1603_p10), %s1589_s30, 0 }
  0x4c   : > { %299 = sbr.rel (%p1603_p10) target bundleno = 688 (0x2b0), region = 44  ;;  %s930_s3 = sshll.u32 (!%p1603_p10), %s1404_s0, 3 }
  0x4d   : > { %s302_s29 = scalar_lea.sflag (!%p1603_p10), [#allocation3], %s1404_s0  ;;  %s305_s21 = scalar_lea.vmem (!%p1603_p10), [#allocation2], %s930_s3 }
  0x51   : > { %1173 = dma.done.wait (%p1604_p5), %s302_s29, 128  }
  0x52   : > { %1175 = vsyncadd (%p1604_p5), %s302_s29, 4294967168  ;;  %s310_s9 = sand.u32 1, %s1292_s27   ;;  %s931_s12 = sshll.u32 %s1404_s0, 2 }
  0x53   : > { %s311_s18 = scalar_lea.sflag [#allocation6], %s310_s9  ;;  %s1416_s11 = scalar_lea.vmem [#allocation5], %s931_s12 }
  0x54   : > { %1177 = dma.done.wait (%p1604_p5), %s311_s18, 64  }
  0x55   : > { %1179 = vsyncadd (%p1604_p5), %s311_s18, 4294967232  ;;  %p1605_p2 = scmp.eq.s32.totalorder %s1292_s27, 0 }
  0x57   : > { %1181 = dma.done.wait (%p1605_p2), [#allocation6], 128   ;;  %p1606_p11 = pmov %p1605_p2 }
  0x58   : > { %p360_p13 = scmp.lt.s32.totalorder %s1202_s24, 1  ;;  %v1431_v1 = vld [vmem:[%s305_s21] sm:$0xff]  ;;  %s1215_s30 = smov 111   ;;  %v369_v3 = vld [vmem:[%s1416_s11] sm:$0xf]  ;;  %v1222_v4 = vmov 0.0   ;;  %v375_v5 = vlaneseq }
  0x59   : > { %1183 = vsyncadd (%p1606_p11), [#allocation6], 4294967168  ;;  %s1216_s19 = smov 112   ;;  %v1435_v2 = vcombine.high %v1431_v1, %v1431_v1  ;;  %s1217_s27 = smov 127   ;;  %666 = vmatprep.mubr.f32.mxu0 %v1222_v4  ;;  %758 = vmatprep.mubr.f32.mxu1 %v1222_v4  ;;  %vm552_vm2 = vcmask 908288   ;;  %vm583_vm5 = vcmask 1043456  }
  0x5a   : > { %s361_s14 = scalar_select %p360_p13, %s1202_s24, 1  ;;  %v1454_v6 = vand.u32 127, %v375_v5  ;;  %vm594_vm6 = vcmask 1044480   ;;  %vm533_vm7 = vcmask 916480   ;;  %vm497_vm8 = vcmask 1039360  }
  0x5b   : > { %s1218_s8 = smov 113   ;;  %s1219_s10 = smov 1   ;;  %vm516_vm10 = vcmask 924672   ;;  %vm479_vm13 = vcmask 7168   ;;  %vm462_vm14 = vcmask 121856   ;;  %vm443_vm15 = vcmask 130048  }
  0x5c   : > { %s934_s28 = sshll.u32 %s361_s14, 2  ;;  %s1220_s15 = smov 15   ;;  %v377_v7 = vadd.s32 128, %v1454_v6  ;;  %v385_v9 = vand.u32 15, %v1454_v6  ;;  %v683_v37 = vld [vmem:[%s1576_s4] sm:$0xf] }
  0x5d   : > { %s366_s17 = scalar_lea.vmem %s1574_s2, %s934_s28  ;;  %s1221_s20 = smov 16  }
  0x5e   : > { %v370_v0 = vld [vmem:[%s366_s17] sm:$0xf]  ;;  %s1223_s29 = smov 17   ;;  %v392_v8 = vand.u32 15, %v377_v7  ;;  %vm408_vm0 = vcmp.lt.s32.totalorder %v377_v7, 240  ;;  %vm1465_vm4 = vcmp.ne.s32.totalorder %v385_v9, 15 }
  0x5f   : > { %550 = vrot.lane.b32.xlu1 %v370_v0, %s1215_s30  ;;  %531 = vrot.lane.b32.xlu0 %v370_v0, %s1216_s19  ;;  %vm1487_vm12 = vcmp.ne.s32.totalorder %v385_v9, 0  ;;  %s945_s11 = sshll.u32 %s1202_s24, 7  ;;  %s358_s14 = scalar_lea.vmem [#allocation8], %s930_s3 }
  0x60   : > { %vm1458_vm1 = vcmp.ne.s32.totalorder %v392_v8, 15  ;;  %vm1474_vm9 = vcmp.ne.s32.totalorder %v392_v8, 0  ;;  %s787_s28 = sshll.u32 %s358_s14, 4  ;;  %s785_s17 = scalar_lea.hbm %s1578_s6, %s945_s11  ;;  %s788_s28 = int_to_ptr.vmem [resolvable:$true] %s787_s28 }
  0x61   : > { %vm541_vm3 = vmand %vm408_vm0, %vm1458_vm1  ;;  %p1615_p1 = scmp.ne.s32.totalorder %s1590_s7, 0 }
  0x62   : > { %vm505_vm11 = vmand %vm408_vm0, %vm1474_vm9 }
  0x63   : > { %546 = vrot.lane.b32.xlu0 %v1431_v1, %s1215_s30  ;;  %548 = vrot.lane.b32.xlu1 %v1435_v2, %s1215_s30  ;;  %s771_s30 = scalar_lea.sflag [#allocation4], %s1404_s0 }
  0x67   : > { %493 = vrot.lane.b32.xlu1 %v1435_v2, %s1217_s27  ;;  %529 = vrot.lane.b32.xlu0 %v1435_v2, %s1216_s19 }
  0x6b   : > { %512 = vrot.lane.b32.xlu1 %v1435_v2, %s1218_s8  ;;  %495 = vrot.lane.b32.xlu0 %v370_v0, %s1217_s27 }
  0x6f   : > { %527 = vrot.lane.b32.xlu1 %v1431_v1, %s1216_s19  ;;  %514 = vrot.lane.b32.xlu0 %v370_v0, %s1218_s8  ;;  %s1122_s19 = scalar_lea.vmem %s788_s28, 128 }
  0x70   : > { %p1123_p3 = scmp.ne.s32.totalorder %s788_s28, %s1122_s19 }
  0x72   : > { %p1124_p4 = pnand %p1123_p3, %p1615_p1 }
  0x73   : > { %510 = vrot.lane.b32.xlu1 %v1431_v1, %s1218_s8  ;;  %491 = vrot.lane.b32.xlu0 %v1431_v1, %s1217_s27  ;;  %s1225_s27 = smov [#allocation8]  }
  0x74   : > { %p1125_p6 = pneg %p1124_p4  ;;  %s1126_s24 = sshll.u32 %s1225_s27, 4  ;;  %s1127_s24 = int_to_ptr.vmem [resolvable:$false] %s1126_s24 }
  0x75   : > { %s1128_s3 = scalar_lea.vmem %s1127_s24, 256  ;;  %p1129_p9 = scmp.lt.s32.totalorder %s788_s28, %s1127_s24 }
  0x76   : > { %p1130_p12 = scmp.lt.s32.totalorder %s1128_s3, %s1122_s19 }
  0x77   : > { %477 = vrot.lane.b32.xlu1 %v1435_v2, %s1219_s10  ;;  %475 = vrot.lane.b32.xlu0 %v1431_v1, %s1219_s10 }
  0x78   : > { %p1131_p0 = por %p1130_p12, %p1129_p9 }
  0x7a   : > { %p1132_p7 = pnand %p1131_p0, %p1125_p6 }
  0x7b   : > { %458 = vrot.lane.b32.xlu1 %v1431_v1, %s1220_s15  ;;  %473 = vrot.lane.b32.xlu0 %v369_v3, %s1219_s10 }
  0x7f   : > { %437 = vrot.lane.b32.xlu1 %v369_v3, %s1221_s20  ;;  %460 = vrot.lane.b32.xlu0 %v1435_v2, %s1220_s15 }
  0x83   : > { %441 = vrot.lane.b32.xlu1 %v1435_v2, %s1221_s20  ;;  %439 = vrot.lane.b32.xlu0 %v1431_v1, %s1221_s20 }
  0x87   : > { %422 = vrot.lane.b32.xlu1 %v1431_v1, %s1223_s29  ;;  %456 = vrot.lane.b32.xlu0 %v369_v3, %s1220_s15 }
  0x8b   : > { %420 = vrot.lane.b32.xlu1 %v369_v3, %s1223_s29  ;;  %424 = vrot.lane.b32.xlu0 %v1435_v2, %s1223_s29 }
  0xd1   : > { %v551_v10 = vpop.permute.xlu1 %550  ;;  %v532_v11 = vpop.permute.xlu0 %531 }
  0xd5   : > { %v547_v14 = vpop.permute.xlu0 %546  ;;  %v549_v15 = vpop.permute.xlu1 %548 }
  0xd6   : > { %v553_v16 = vsel %vm552_vm2, %v547_v14, %v549_v15  ;;  %v554_v17 = vsel %vm552_vm2, %v549_v15, %v551_v10 }
  0xd7   : > { %v558_v18 = vsel %vm541_vm3, %v554_v17, 0.0  ;;  %v557_v19 = vsel %vm1465_vm4, %v553_v16, 0.0 }
  0xd8   : > { %v593_v20 = vsel %vm583_vm5, %v558_v18, 1.0  ;;  %v592_v21 = vsel %vm583_vm5, %v557_v19, 1.0 }
  0xd9   : > { %935 = vmatprep.subr.msk.mxu0 %vm594_vm6, %v593_v20  ;;  %v494_v22 = vpop.permute.xlu1 %493  ;;  %v530_v23 = vpop.permute.xlu0 %529 }
  0xda   : > { %936 = vmatpush1.msk.msra.mxu0 %vm594_vm6, %v592_v21  ;;  %v535_v24 = vsel %vm533_vm7, %v530_v23, %v532_v11 }
  0xdb   : > { %v539_v28 = vsel %vm408_vm0, %v535_v24, 0.0  ;;  %vm405_vm0 = vcmp.ge.s32.totalorder %v1454_v6, 16  ;;  %v1224_v24 = vmov 0  }
  0xdc   : > { %v580_v32 = vrot.slane %v539_v28, 4  ;;  %vm450_vm2 = vmand %vm405_vm0, %vm1465_vm4  ;;  %1034 = vset.pattern.permute.xlu0 %v1224_v24 }
  0xdd   : > { %v513_v25 = vpop.permute.xlu1 %512  ;;  %v496_v26 = vpop.permute.xlu0 %495  ;;  %vm413_vm3 = vmand %vm405_vm0, %vm1487_vm12 }
  0xde   : > { %v499_v29 = vsel %vm497_vm8, %v494_v22, %v496_v26 }
  0xdf   : > { %v503_v33 = vsel %vm1458_vm1, %v499_v29, 0.0 }
  0xe0   : > { %v574_v39 = vrot.slane %v503_v33, 4 }
  0xe1   : > { %v528_v30 = vpop.permute.xlu1 %527  ;;  %v515_v31 = vpop.permute.xlu0 %514 }
  0xe2   : > { %v518_v34 = vsel %vm516_vm10, %v513_v25, %v515_v31  ;;  %v534_v35 = vsel %vm533_vm7, %v528_v30, %v530_v23  ;;  %v589_v51 = vsel %vm583_vm5, %v1435_v2, %v574_v39  ;;  %v684_v23 = vld [vmem:[%s1577_s5] sm:$0xf] }
  0xe3   : > { %v522_v36 = vsel %vm505_vm11, %v518_v34, 0.0  ;;  %v579_v42 = vrot.slane %v534_v35, 4  ;;  %687 = vperm.xlu0 %1034, %v684_v23  }
  0xe4   : > { %v591_v38 = vsel %vm583_vm5, %v522_v36, %v580_v32 }
  0xe5   : > { %v511_v40 = vpop.permute.xlu1 %510  ;;  %626 = vmatprep.subr.mxu0 %v591_v38  ;;  %v492_v41 = vpop.permute.xlu0 %491 }
  0xe6   : > { %v517_v43 = vsel %vm516_vm10, %v511_v40, %v513_v25  ;;  %v498_v44 = vsel %vm497_vm8, %v492_v41, %v494_v22  ;;  %v597_v22 = vld [vmem:[#allocation7] sm:$0xff] }
  0xe7   : > { %v521_v45 = vsel %vm1487_vm12, %v517_v43, 0.0  ;;  %v502_v46 = vsel %vm1465_vm4, %v498_v44, 0.0  ;;  %vm598_vm4 = vcmask 326656  }
  0xe8   : > { %v573_v47 = vrot.slane %v502_v46, 4  ;;  %v590_v48 = vsel %vm583_vm5, %v521_v45, %v579_v42 }
  0xe9   : > { %v478_v49 = vpop.permute.xlu1 %477  ;;  %627 = vmatpush1.msra.mxu0 %v590_v48  ;;  %v476_v50 = vpop.permute.xlu0 %475 }
  0xea   : > { %628 = vmatprep.subr.mxu0 %v589_v51  ;;  %v588_v52 = vsel %vm583_vm5, %v1431_v1, %v573_v47  ;;  %v481_v53 = vsel %vm479_vm13, %v476_v50, %v478_v49 }
  0xeb   : > { %629 = vmatpush1.msra.mxu0 %v588_v52  ;;  %v485_v56 = vsel %vm1474_vm9, %v481_v53, 0.0 }
  0xec   : > { %v568_v59 = vrot.slane %v485_v56, 4 }
  0xed   : > { %v459_v54 = vpop.permute.xlu1 %458  ;;  %v474_v55 = vpop.permute.xlu0 %473 }
  0xee   : > { %v480_v62 = vsel %vm479_vm13, %v474_v55, %v476_v50 }
  0xef   : > { %v484_v2 = vsel %vm1487_vm12, %v480_v62, 0.0 }
  0xf0   : > { %v567_v7 = vrot.slane %v484_v2, 4 }
  0xf1   : > { %v438_v57 = vpop.permute.xlu1 %437  ;;  %v461_v58 = vpop.permute.xlu0 %460 }
  0xf2   : > { %v464_v60 = vsel %vm462_vm14, %v459_v54, %v461_v58 }
  0xf3   : > { %v468_v61 = vsel %vm1458_vm1, %v464_v60, 0.0  ;;  %vm426_vm1 = vcmask 138240  }
  0xf4   : > { %v587_v63 = vsel %vm583_vm5, %v468_v61, %v568_v59 }
  0xf5   : > { %v442_v0 = vpop.permute.xlu1 %441  ;;  %630 = vmatprep.subr.mxu0 %v587_v63  ;;  %v440_v1 = vpop.permute.xlu0 %439 }
  0xf6   : > { %v444_v3 = vsel %vm443_vm15, %v438_v57, %v440_v1  ;;  %v445_v9 = vsel %vm443_vm15, %v440_v1, %v442_v0 }
  0xf7   : > { %v448_v10 = vsel %vm405_vm0, %v444_v3, 0.0  ;;  %v562_v13 = vrot.slane %v445_v9, 4 }
  0xf8   : > { %v561_v15 = vrot.slane %v448_v10, 4 }
  0xf9   : > { %v423_v4 = vpop.permute.xlu1 %422  ;;  %v457_v5 = vpop.permute.xlu0 %456 }
  0xfa   : > { %v463_v8 = vsel %vm462_vm14, %v457_v5, %v459_v54 }
  0xfb   : > { %v467_v11 = vsel %vm450_vm2, %v463_v8, 0.0 }
  0xfc   : > { %v586_v12 = vsel %vm583_vm5, %v467_v11, %v567_v7 }
  0xfd   : > { %v421_v14 = vpop.permute.xlu1 %420  ;;  %631 = vmatpush1.msra.mxu0 %v586_v12  ;;  %v425_v6 = vpop.permute.xlu0 %424 }
  0xfe   : > { %v427_v16 = vsel %vm426_vm1, %v421_v14, %v423_v4  ;;  %v428_v17 = vsel %vm426_vm1, %v423_v4, %v425_v6 }
  0xff   : > { %v431_v18 = vsel %vm413_vm3, %v427_v16, 0.0  ;;  %v432_v19 = vsel %vm1474_vm9, %v428_v17, 0.0 }
 0x100   : > { %v585_v20 = vsel %vm583_vm5, %v432_v19, %v562_v13  ;;  %v584_v21 = vsel %vm583_vm5, %v431_v18, %v561_v15  ;;  %vm690_vm5 = vcmask 64512  }
 0x101   : > { %632 = vmatprep.subr.mxu0 %v585_v20 }
 0x102   : > { %633 = vmatpush1.msra.mxu0 %v584_v21 }
 0x103   : > { %937 = vmatmul.mubr.msk.f32.vlgmr.msra.gmra.mxu0 %vm598_vm4, %v597_v22 }
 0x15e   : > { %v688_v39 = vpop.permute.xlu0 %687 }
 0x1c3   : > { %v668_v25 = vpop.f32.mrf.mxu0 }
 0x1c4   : > { %v675_v26 = vmul.f32 0.70710677, %v668_v25  ;;  %v673_v34 = vmul.f32 0.5, %v668_v25 }
 0x1c5   : > { %v670_v27 = vpop.f32.mrf.mxu0 }
 0x1c6   : > { %1036 = verf.f32 %v675_v26  ;;  %v676_v28 = vmul.f32 0.70710677, %v670_v27  ;;  %v674_v32 = vmul.f32 0.5, %v670_v27 }
 0x1c8   : > { %1038 = verf.f32 %v676_v28 }
 0x1d3   : > { %v1037_v29 = vpop.eup %1036 }
 0x1d4   : > { %v679_v31 = vadd.f32 1.0, %v1037_v29 }
 0x1d5   : > { %v1039_v30 = vpop.eup %1038 }
 0x1d6   : > { %v680_v33 = vadd.f32 1.0, %v1039_v30  ;;  %v681_v36 = vmul.f32 %v679_v31, %v673_v34 }
 0x1d8   : > { %v682_v35 = vmul.f32 %v680_v33, %v674_v32 }
 0x1da   : > { %724 = vmatprep.subr.mxu1 %v682_v35 }
 0x1db   : > { %725 = vmatpush1.msra.mxu1 %v681_v36 }
 0x1dc   : > { %938 = vmatmul.mubr.msk.f32.vlgmr.msra.gmra.mxu1 %vm690_vm5, %v683_v37 }
 0x29c   : > { %v760_v38 = vpop.f32.mrf.mxu1 }
 0x29d   : > { %v761_v41 = vadd.f32 %v760_v38, %v688_v39 }
 0x29e   : > { %v762_v40 = vpop.f32.mrf.mxu1 }
 0x29f   : > { %v763_v42 = vadd.f32 %v762_v40, %v688_v39 }
 0x2a1   : > { %v767_v43 = vcombine.low %v761_v41, %v763_v42 }
 0x2a3   : > { %769 = vst [vmem:[%s358_s14] sm:$0xff] %v767_v43 }
 0x2a4   : > { %1135 = shalt.err (!%p1132_p7)
}
 0x2a5   : > { %s1136_s8 = scalar_lea.hbm %s785_s17, 128  ;;  %s1140_s15 = scalar_lea.hbm %s1578_s6, 256 }
 0x2a6   : > { %p1137_p8 = scmp.ne.s32.totalorder %s785_s17, %s1136_s8  ;;  %p1141_p2 = scmp.lt.s32.totalorder %s785_s17, %s1578_s6 }
 0x2a7   : > { %p1142_p11 = scmp.lt.s32.totalorder %s1140_s15, %s1136_s8 }
 0x2a8   : > { %p1138_p10 = pnand %p1137_p8, %p1615_p1 }
 0x2a9   : > { %p1143_p13 = por %p1142_p11, %p1141_p2 }
 0x2aa   : > { %p1139_p5 = pneg %p1138_p10 }
 0x2ac   : > { %p1144_p3 = pnand %p1143_p13, %p1139_p5 }
 0x2ae   : > { %1147 = shalt.err (!%p1144_p3)
}
 0x2af   : > { %954 = dma.vmem_to_hbm [thread:$0]  (%p1615_p1), %s788_s28, 128, %s785_s17, %s771_s30  }
 0x2b0 PF: > { %s1616_s21 = sld [smem:[#allocation13_spill]]  ;;  %p1619_p6 = scmp.ge.s32.totalorder %s1210_s26, 2 }
 0x2b1   : > { %s1617_s9 = sld [smem:[#allocation14_spill]] }
 0x2b6   : > { %s799_s12 = sand.u32 1, %s1616_s21  }
 0x2b7   : > { %p1618_p4 = scmp.ne.s32.totalorder %s1617_s9, 0  ;;  %s800_s18 = scalar_lea.sflag [#allocation4], %s799_s12 }
 0x2b9   : > { %p968_p9 = pnand %p1619_p6, %p1618_p4 }
 0x2bb   : > { %p969_p12 = pneg %p968_p9 }
 0x2bd   : > { %1185 = dma.done.wait (%p969_p12), %s800_s18, 128  }
 0x2be   : > { %1187 = vsyncadd (%p969_p12), %s800_s18, 4294967168  ;;  %s25_s26 = sadd.s32 1, %s1210_s26   ;;  %s1620_s11 = sld [smem:[#allocation16_spill]] }
 0x2bf   : > { %p22_p0 = scmp.ge.s32.totalorder %s25_s26, 4   ;;  %s1621_s7 = sld [smem:[#allocation15_spill]] }
 0x2c0   : > { %s1622_s21 = smov %s1194_s22  ;;  %s1623_s22 = smov %s1198_s23 }
 0x2c1   : > { %s1625_s24 = smov %s1206_s25  ;;  %24 = sbr.rel (!%p22_p0) target bundleno = 11 (0xb), region = 109 }
 0x2c4   : > { %s1624_s23 = smov %s1620_s11 }
 0x2c5   : > { %s1626_s25 = smov %s1621_s7 }
 0x2c6   :  { %805 = vsyncpa [#allocation3], 1 }
 0x2c7   :  { %807 = vsyncpa [#allocation3 + $0x1], 1 }
 0x2c8   :  { %808 = vsyncpa [#allocation6], 1 }
 0x2c9   :  { %810 = vsyncpa [#allocation6 + $0x1], 1 }
 0x2ca   :  { %811 = vsyncpa [#allocation4], 1 }
 0x2cb   :  { %813 = vsyncpa [#allocation4 + $0x1], 1 }

</bundles_post_ra>
